<compile_context>
chip_gen: v5e
topology: v5e:2x2
jax: 0.10.0
libtpu: 0.0.40
codegen_flags: <defaults>
</compile_context>

<pallas_src>
import functools

import jax
import jax.numpy as jnp
from jax import lax
from jax.experimental import pallas as pl
from jax.experimental.pallas import tpu as pltpu


def _conv_block_kernel(x_ref, w_ref, shift_ref, o_ref, rhs_ref, *,
                       kernel_size, padding, l_in, l_out, c_in, b_tile,
                       activation):
    # x_ref:     (B_TILE, C_in, L_in)        -- unpadded, native NCL layout
    # w_ref:     (C_out, K*C_in)             -- BN-scale-folded, im2col row order (k, c_in)
    # shift_ref: (C_out, 1)                  -- folded conv-bias + BN shift
    # o_ref:     (C_out, B_TILE*L_out)       -- lane-dense packed output block
    # rhs_ref:   (K*C_in, B_TILE*L_out)      -- VMEM im2col scratch

    # ---- Build the im2col RHS in VMEM (zero padding written directly here). ----
    for k in range(kernel_size):                    # static unroll (K small)
        s = k - padding                             # input shift for this tap
        lo = max(0, -s)                             # first valid output column
        hi = min(l_out, l_in - s)                   # one past last valid column
        hi = max(hi, lo)
        rows = slice(k * c_in, (k + 1) * c_in)
        for b in range(b_tile):                     # static unroll
            base = b * l_out
            if lo > 0:                              # left zero-pad strip
                rhs_ref[rows, base:base + lo] = jnp.zeros((c_in, lo), jnp.float32)
            if hi < l_out:                          # right zero-pad strip
                rhs_ref[rows, base + hi:base + l_out] = jnp.zeros(
                    (c_in, l_out - hi), jnp.float32)
            if hi > lo:                             # shifted valid slab
                rhs_ref[rows, base + lo:base + hi] = (
                    x_ref[b, :, lo + s:hi + s].astype(jnp.float32))

    # ---- One big MXU matmul: (C_out, K*C_in) @ (K*C_in, B_TILE*L_out). ----
    acc = jnp.dot(w_ref[...], rhs_ref[...], preferred_element_type=jnp.float32)

    # ---- Fused epilogue: folded shift + activation, full-width lane-dense store. ----
    y = acc + shift_ref[...]
    if activation == "relu":
        y = jnp.maximum(y, 0.0)
    else:  # "tanh" -> EUP
        y = jnp.tanh(y)
    o_ref[...] = y.astype(o_ref.dtype)


def _pick_batch_tile(n, l_out, lane_target=256):
    """Smallest divisor of n whose packed block width is lane-aligned and >= target."""
    divisors = [d for d in range(1, n + 1) if n % d == 0]
    # Block last dim must be a multiple of 128 unless the block spans the full array.
    valid = [d for d in divisors if d == n or (d * l_out) % 128 == 0]
    for d in valid:
        if d * l_out >= lane_target:
            return d
    return valid[-1]   # d == n is always valid (block == full array)


def conv_block_forward(x, conv_w, conv_b, bn_gamma, bn_beta, bn_mean, bn_var,
                       *, padding, eps=1e-5, activation="relu"):
    """x: (N, C_in, L) float32.  Returns (N, C_out, L_out)."""
    assert activation in ("relu", "tanh")
    n, c_in, l_in = x.shape
    c_out, _, k = conv_w.shape
    l_out = l_in + 2 * padding - k + 1

    # Fold BatchNorm (eval, running stats) + conv bias:
    #   y = scale * (conv(x) + b - mean) + beta,  scale = gamma / sqrt(var + eps)
    # => conv with (w * scale), then add shift = (b - mean) * scale + beta.
    scale = bn_gamma * lax.rsqrt(bn_var + eps)                       # (C_out,)
    w_folded = conv_w * scale[:, None, None]                         # (C_out, C_in, K)
    shift = (conv_b - bn_mean) * scale + bn_beta                     # (C_out,)

    # Weight layout for the im2col matmul: row order (k, c_in) on the RHS,
    # so LHS columns must be ordered (k, c_in) too.
    w2d = jnp.transpose(w_folded, (0, 2, 1)).reshape(c_out, k * c_in)
    w2d = w2d.astype(jnp.float32)
    shift2d = shift.reshape(c_out, 1).astype(jnp.float32)

    b_tile = _pick_batch_tile(n, l_out)
    n_groups = n // b_tile
    w_blk = b_tile * l_out                                            # output lanes / step

    kernel = functools.partial(
        _conv_block_kernel, kernel_size=k, padding=padding,
        l_in=l_in, l_out=l_out, c_in=c_in, b_tile=b_tile, activation=activation)

    flops = 2 * n * c_out * c_in * k * l_out
    bytes_accessed = int(x.size * x.dtype.itemsize
                         + w2d.size * 4 + shift2d.size * 4
                         + n * c_out * l_out * x.dtype.itemsize)

    y_packed = pl.pallas_call(
        kernel,
        out_shape=jax.ShapeDtypeStruct((c_out, n * l_out), x.dtype),
        grid_spec=pltpu.PrefetchScalarGridSpec(
            num_scalar_prefetch=0,
            grid=(n_groups,),
            in_specs=[
                # x: blocked over batch only; (C_in, L) are full dims -> no (8,128) issue.
                pl.BlockSpec((b_tile, c_in, l_in), lambda g: (g, 0, 0)),
                pl.BlockSpec((c_out, k * c_in), lambda g: (0, 0)),    # resident weights
                pl.BlockSpec((c_out, 1), lambda g: (0, 0)),           # resident shift
            ],
            out_specs=pl.BlockSpec((c_out, w_blk), lambda g: (0, g)),
            scratch_shapes=[pltpu.VMEM((k * c_in, w_blk), jnp.float32)],
        ),
        compiler_params=pltpu.CompilerParams(
            dimension_semantics=("parallel",),      # batch groups split across TCs (v7x)
            vmem_limit_bytes=32 * 1024 * 1024,      # safe on v5e/v6e/v7x
        ),
        cost_estimate=pl.CostEstimate(
            flops=flops, transcendentals=0, bytes_accessed=bytes_accessed),
    )(x, w2d, shift2d)

    # Unpack (C_out, N*L_out) -> (N, C_out, L_out).  Pure layout plumbing; the
    # packed 2-D form is what makes the in-kernel stores lane-dense.
    return jnp.transpose(y_packed.reshape(c_out, n, l_out), (1, 0, 2))


def _reference(x, conv_w, conv_b, bn_gamma, bn_beta, bn_mean, bn_var,
               *, padding, eps=1e-5, activation="relu"):
    y = lax.conv_general_dilated(
        x, conv_w,
        window_strides=(1,), padding=[(padding, padding)],
        dimension_numbers=("NCH", "OIH", "NCH"),
    ) + conv_b[None, :, None]
    y = (y - bn_mean[None, :, None]) / jnp.sqrt(bn_var + eps)[None, :, None]
    y = y * bn_gamma[None, :, None] + bn_beta[None, :, None]
    if activation == "relu":
        return jnp.maximum(y, 0.0)
    return jnp.tanh(y)


if __name__ == "__main__":
    # Small shapes consistent with ConvBlock(input_dim=16, output_dim=32,
    # kernel_size=5, padding=2); L chosen so the packed output block is
    # lane-dense (B_TILE=2 -> 256-wide blocks, grid of 2 parallel steps).
    N, C_IN, L = 4, 16, 128
    C_OUT, K, PAD = 32, 5, 2

    key = jax.random.PRNGKey(0)
    kx, kw, kb, kg, kbt, km, kv = jax.random.split(key, 7)

    x = jax.random.normal(kx, (N, C_IN, L), dtype=jnp.float32)
    conv_w = jax.random.normal(kw, (C_OUT, C_IN, K), dtype=jnp.float32) * 0.1
    conv_b = jax.random.normal(kb, (C_OUT,), dtype=jnp.float32) * 0.1
    bn_gamma = 1.0 + 0.1 * jax.random.normal(kg, (C_OUT,), dtype=jnp.float32)
    bn_beta = 0.1 * jax.random.normal(kbt, (C_OUT,), dtype=jnp.float32)
    bn_mean = 0.1 * jax.random.normal(km, (C_OUT,), dtype=jnp.float32)
    bn_var = jnp.abs(1.0 + 0.1 * jax.random.normal(kv, (C_OUT,), dtype=jnp.float32))

    out = conv_block_forward(x, conv_w, conv_b, bn_gamma, bn_beta, bn_mean, bn_var,
                             padding=PAD)
    out = jax.block_until_ready(out)

    ref = _reference(x, conv_w, conv_b, bn_gamma, bn_beta, bn_mean, bn_var, padding=PAD)
    assert out.shape == (N, C_OUT, L)
    assert jnp.allclose(out, ref, atol=1e-4, rtol=1e-4), "mismatch vs reference"

    print("KERNEL_OK")
</pallas_src>

<mosaic_0001>
module attributes {stable_mosaic.version = 11 : i64} {
  func.func @_conv_block_kernel(%arg0: i32, %arg1: memref<2x16x128xf32, #tpu.memory_space<vmem>>, %arg2: memref<32x80xf32, #tpu.memory_space<vmem>>, %arg3: memref<32x1xf32, #tpu.memory_space<vmem>>, %arg4: memref<32x256xf32, #tpu.memory_space<vmem>>, %arg5: memref<80x256xf32, #tpu.memory_space<vmem>>) attributes {dimension_semantics = [#tpu.dimension_semantics<parallel>], iteration_bounds = array<i64: 2>, scalar_prefetch = 0 : i64, scratch_operands = 1 : i64, tpu.core_type = #tpu.core_type<tc>, window_params = [{transform_indices = @transform_0, window_bounds = array<i64: 2, 16, 128>}, {pipeline_mode = #tpu.pipeline_mode<synchronous>, transform_indices = @transform_1, window_bounds = array<i64: 32, 80>}, {pipeline_mode = #tpu.pipeline_mode<synchronous>, transform_indices = @transform_2, window_bounds = array<i64: 32, 1>}, {transform_indices = @transform_3, window_bounds = array<i64: 32, 256>}]} {
    %cst = arith.constant 0.000000e+00 : f32
    %0 = vector.broadcast %cst : f32 to vector<16x2xf32>
    %c0 = arith.constant 0 : index
    %c0_0 = arith.constant 0 : index
    %1 = vector.load %arg5[%c0, %c0_0] : memref<80x256xf32, #tpu.memory_space<vmem>>, vector<16x2xf32>
    tpu.vector_store %arg5[%c0, %c0_0], %0 {strides = array<i32>} : memref<80x256xf32, #tpu.memory_space<vmem>>, vector<16x2xf32>,
    %c0_1 = arith.constant 0 : index
    %c0_2 = arith.constant 0 : index
    %c0_3 = arith.constant 0 : index
    %2 = vector.load %arg1[%c0_1, %c0_2, %c0_3] : memref<2x16x128xf32, #tpu.memory_space<vmem>>, vector<1x16x126xf32>
    %3 = vector.shape_cast %2 : vector<1x16x126xf32> to vector<16x126xf32>
    %c0_4 = arith.constant 0 : index
    %c2 = arith.constant 2 : index
    %4 = vector.load %arg5[%c0_4, %c2] : memref<80x256xf32, #tpu.memory_space<vmem>>, vector<16x126xf32>
    tpu.vector_store %arg5[%c0_4, %c2], %3 {strides = array<i32>} : memref<80x256xf32, #tpu.memory_space<vmem>>, vector<16x126xf32>,
    %cst_5 = arith.constant 0.000000e+00 : f32
    %5 = vector.broadcast %cst_5 : f32 to vector<16x2xf32>
    %c0_6 = arith.constant 0 : index
    %c128 = arith.constant 128 : index
    %6 = vector.load %arg5[%c0_6, %c128] : memref<80x256xf32, #tpu.memory_space<vmem>>, vector<16x2xf32>
    tpu.vector_store %arg5[%c0_6, %c128], %5 {strides = array<i32>} : memref<80x256xf32, #tpu.memory_space<vmem>>, vector<16x2xf32>,
    %c1 = arith.constant 1 : index
    %c0_7 = arith.constant 0 : index
    %c0_8 = arith.constant 0 : index
    %7 = vector.load %arg1[%c1, %c0_7, %c0_8] : memref<2x16x128xf32, #tpu.memory_space<vmem>>, vector<1x16x126xf32>
    %8 = vector.shape_cast %7 : vector<1x16x126xf32> to vector<16x126xf32>
    %c0_9 = arith.constant 0 : index
    %c130 = arith.constant 130 : index
    %9 = vector.load %arg5[%c0_9, %c130] : memref<80x256xf32, #tpu.memory_space<vmem>>, vector<16x126xf32>
    tpu.vector_store %arg5[%c0_9, %c130], %8 {strides = array<i32>} : memref<80x256xf32, #tpu.memory_space<vmem>>, vector<16x126xf32>,
    %cst_10 = arith.constant 0.000000e+00 : f32
    %10 = vector.broadcast %cst_10 : f32 to vector<16x1xf32>
    %c16 = arith.constant 16 : index
    %c0_11 = arith.constant 0 : index
    %11 = vector.load %arg5[%c16, %c0_11] : memref<80x256xf32, #tpu.memory_space<vmem>>, vector<16x1xf32>
    tpu.vector_store %arg5[%c16, %c0_11], %10 {strides = array<i32>} : memref<80x256xf32, #tpu.memory_space<vmem>>, vector<16x1xf32>,
    %c0_12 = arith.constant 0 : index
    %c0_13 = arith.constant 0 : index
    %c0_14 = arith.constant 0 : index
    %12 = vector.load %arg1[%c0_12, %c0_13, %c0_14] : memref<2x16x128xf32, #tpu.memory_space<vmem>>, vector<1x16x127xf32>
    %13 = vector.shape_cast %12 : vector<1x16x127xf32> to vector<16x127xf32>
    %c16_15 = arith.constant 16 : index
    %c1_16 = arith.constant 1 : index
    %14 = vector.load %arg5[%c16_15, %c1_16] : memref<80x256xf32, #tpu.memory_space<vmem>>, vector<16x127xf32>
    tpu.vector_store %arg5[%c16_15, %c1_16], %13 {strides = array<i32>} : memref<80x256xf32, #tpu.memory_space<vmem>>, vector<16x127xf32>,
    %cst_17 = arith.constant 0.000000e+00 : f32
    %15 = vector.broadcast %cst_17 : f32 to vector<16x1xf32>
    %c16_18 = arith.constant 16 : index
    %c128_19 = arith.constant 128 : index
    %16 = vector.load %arg5[%c16_18, %c128_19] : memref<80x256xf32, #tpu.memory_space<vmem>>, vector<16x1xf32>
    tpu.vector_store %arg5[%c16_18, %c128_19], %15 {strides = array<i32>} : memref<80x256xf32, #tpu.memory_space<vmem>>, vector<16x1xf32>,
    %c1_20 = arith.constant 1 : index
    %c0_21 = arith.constant 0 : index
    %c0_22 = arith.constant 0 : index
    %17 = vector.load %arg1[%c1_20, %c0_21, %c0_22] : memref<2x16x128xf32, #tpu.memory_space<vmem>>, vector<1x16x127xf32>
    %18 = vector.shape_cast %17 : vector<1x16x127xf32> to vector<16x127xf32>
    %c16_23 = arith.constant 16 : index
    %c129 = arith.constant 129 : index
    %19 = vector.load %arg5[%c16_23, %c129] : memref<80x256xf32, #tpu.memory_space<vmem>>, vector<16x127xf32>
    tpu.vector_store %arg5[%c16_23, %c129], %18 {strides = array<i32>} : memref<80x256xf32, #tpu.memory_space<vmem>>, vector<16x127xf32>,
    %c0_24 = arith.constant 0 : index
    %c0_25 = arith.constant 0 : index
    %c0_26 = arith.constant 0 : index
    %20 = vector.load %arg1[%c0_24, %c0_25, %c0_26] : memref<2x16x128xf32, #tpu.memory_space<vmem>>, vector<1x16x128xf32>
    %21 = vector.shape_cast %20 : vector<1x16x128xf32> to vector<16x128xf32>
    %c32 = arith.constant 32 : index
    %c0_27 = arith.constant 0 : index
    %22 = vector.load %arg5[%c32, %c0_27] : memref<80x256xf32, #tpu.memory_space<vmem>>, vector<16x128xf32>
    tpu.vector_store %arg5[%c32, %c0_27], %21 {strides = array<i32>} : memref<80x256xf32, #tpu.memory_space<vmem>>, vector<16x128xf32>,
    %c1_28 = arith.constant 1 : index
    %c0_29 = arith.constant 0 : index
    %c0_30 = arith.constant 0 : index
    %23 = vector.load %arg1[%c1_28, %c0_29, %c0_30] : memref<2x16x128xf32, #tpu.memory_space<vmem>>, vector<1x16x128xf32>
    %24 = vector.shape_cast %23 : vector<1x16x128xf32> to vector<16x128xf32>
    %c32_31 = arith.constant 32 : index
    %c128_32 = arith.constant 128 : index
    %25 = vector.load %arg5[%c32_31, %c128_32] : memref<80x256xf32, #tpu.memory_space<vmem>>, vector<16x128xf32>
    tpu.vector_store %arg5[%c32_31, %c128_32], %24 {strides = array<i32>} : memref<80x256xf32, #tpu.memory_space<vmem>>, vector<16x128xf32>,
    %cst_33 = arith.constant 0.000000e+00 : f32
    %26 = vector.broadcast %cst_33 : f32 to vector<16x1xf32>
    %c48 = arith.constant 48 : index
    %c127 = arith.constant 127 : index
    %27 = vector.load %arg5[%c48, %c127] : memref<80x256xf32, #tpu.memory_space<vmem>>, vector<16x1xf32>
    tpu.vector_store %arg5[%c48, %c127], %26 {strides = array<i32>} : memref<80x256xf32, #tpu.memory_space<vmem>>, vector<16x1xf32>,
    %c0_34 = arith.constant 0 : index
    %c0_35 = arith.constant 0 : index
    %c1_36 = arith.constant 1 : index
    %28 = vector.load %arg1[%c0_34, %c0_35, %c1_36] : memref<2x16x128xf32, #tpu.memory_space<vmem>>, vector<1x16x127xf32>
    %29 = vector.shape_cast %28 : vector<1x16x127xf32> to vector<16x127xf32>
    %c48_37 = arith.constant 48 : index
    %c0_38 = arith.constant 0 : index
    %30 = vector.load %arg5[%c48_37, %c0_38] : memref<80x256xf32, #tpu.memory_space<vmem>>, vector<16x127xf32>
    tpu.vector_store %arg5[%c48_37, %c0_38], %29 {strides = array<i32>} : memref<80x256xf32, #tpu.memory_space<vmem>>, vector<16x127xf32>,
    %cst_39 = arith.constant 0.000000e+00 : f32
    %31 = vector.broadcast %cst_39 : f32 to vector<16x1xf32>
    %c48_40 = arith.constant 48 : index
    %c255 = arith.constant 255 : index
    %32 = vector.load %arg5[%c48_40, %c255] : memref<80x256xf32, #tpu.memory_space<vmem>>, vector<16x1xf32>
    tpu.vector_store %arg5[%c48_40, %c255], %31 {strides = array<i32>} : memref<80x256xf32, #tpu.memory_space<vmem>>, vector<16x1xf32>,
    %c1_41 = arith.constant 1 : index
    %c0_42 = arith.constant 0 : index
    %c1_43 = arith.constant 1 : index
    %33 = vector.load %arg1[%c1_41, %c0_42, %c1_43] : memref<2x16x128xf32, #tpu.memory_space<vmem>>, vector<1x16x127xf32>
    %34 = vector.shape_cast %33 : vector<1x16x127xf32> to vector<16x127xf32>
    %c48_44 = arith.constant 48 : index
    %c128_45 = arith.constant 128 : index
    %35 = vector.load %arg5[%c48_44, %c128_45] : memref<80x256xf32, #tpu.memory_space<vmem>>, vector<16x127xf32>
    tpu.vector_store %arg5[%c48_44, %c128_45], %34 {strides = array<i32>} : memref<80x256xf32, #tpu.memory_space<vmem>>, vector<16x127xf32>,
    %cst_46 = arith.constant 0.000000e+00 : f32
    %36 = vector.broadcast %cst_46 : f32 to vector<16x2xf32>
    %c64 = arith.constant 64 : index
    %c126 = arith.constant 126 : index
    %37 = vector.load %arg5[%c64, %c126] : memref<80x256xf32, #tpu.memory_space<vmem>>, vector<16x2xf32>
    tpu.vector_store %arg5[%c64, %c126], %36 {strides = array<i32>} : memref<80x256xf32, #tpu.memory_space<vmem>>, vector<16x2xf32>,
    %c0_47 = arith.constant 0 : index
    %c0_48 = arith.constant 0 : index
    %c2_49 = arith.constant 2 : index
    %38 = vector.load %arg1[%c0_47, %c0_48, %c2_49] : memref<2x16x128xf32, #tpu.memory_space<vmem>>, vector<1x16x126xf32>
    %39 = vector.shape_cast %38 : vector<1x16x126xf32> to vector<16x126xf32>
    %c64_50 = arith.constant 64 : index
    %c0_51 = arith.constant 0 : index
    %40 = vector.load %arg5[%c64_50, %c0_51] : memref<80x256xf32, #tpu.memory_space<vmem>>, vector<16x126xf32>
    tpu.vector_store %arg5[%c64_50, %c0_51], %39 {strides = array<i32>} : memref<80x256xf32, #tpu.memory_space<vmem>>, vector<16x126xf32>,
    %cst_52 = arith.constant 0.000000e+00 : f32
    %41 = vector.broadcast %cst_52 : f32 to vector<16x2xf32>
    %c64_53 = arith.constant 64 : index
    %c254 = arith.constant 254 : index
    %42 = vector.load %arg5[%c64_53, %c254] : memref<80x256xf32, #tpu.memory_space<vmem>>, vector<16x2xf32>
    tpu.vector_store %arg5[%c64_53, %c254], %41 {strides = array<i32>} : memref<80x256xf32, #tpu.memory_space<vmem>>, vector<16x2xf32>,
    %c1_54 = arith.constant 1 : index
    %c0_55 = arith.constant 0 : index
    %c2_56 = arith.constant 2 : index
    %43 = vector.load %arg1[%c1_54, %c0_55, %c2_56] : memref<2x16x128xf32, #tpu.memory_space<vmem>>, vector<1x16x126xf32>
    %44 = vector.shape_cast %43 : vector<1x16x126xf32> to vector<16x126xf32>
    %c64_57 = arith.constant 64 : index
    %c128_58 = arith.constant 128 : index
    %45 = vector.load %arg5[%c64_57, %c128_58] : memref<80x256xf32, #tpu.memory_space<vmem>>, vector<16x126xf32>
    tpu.vector_store %arg5[%c64_57, %c128_58], %44 {strides = array<i32>} : memref<80x256xf32, #tpu.memory_space<vmem>>, vector<16x126xf32>,
    %c0_59 = arith.constant 0 : index
    %c0_60 = arith.constant 0 : index
    %46 = vector.load %arg2[%c0_59, %c0_60] : memref<32x80xf32, #tpu.memory_space<vmem>>, vector<32x80xf32>
    %c0_61 = arith.constant 0 : index
    %c0_62 = arith.constant 0 : index
    %47 = vector.load %arg5[%c0_61, %c0_62] : memref<80x256xf32, #tpu.memory_space<vmem>>, vector<80x256xf32>
    %cst_63 = arith.constant dense<0.000000e+00> : vector<32x256xf32>
    %48 = tpu.matmul %46, %47, %cst_63 {dimension_numbers = #tpu.dot_dimension_numbers<[1], [0], [0], [1], [0, 0, 1, 1], [], []>} : vector<32x80xf32>, vector<80x256xf32>, vector<32x256xf32> -> vector<32x256xf32>
    %c0_64 = arith.constant 0 : index
    %c0_65 = arith.constant 0 : index
    %49 = vector.load %arg3[%c0_64, %c0_65] : memref<32x1xf32, #tpu.memory_space<vmem>>, vector<32x1xf32>
    %50 = vector.broadcast %49 : vector<32x1xf32> to vector<32x256xf32>
    %51 = arith.addf %48, %50 : vector<32x256xf32>
    %cst_66 = arith.constant 0.000000e+00 : f32
    %52 = vector.broadcast %cst_66 : f32 to vector<32x256xf32>
    %53 = arith.maximumf %51, %52 : vector<32x256xf32>
    %c0_67 = arith.constant 0 : index
    %c0_68 = arith.constant 0 : index
    %54 = vector.load %arg4[%c0_67, %c0_68] : memref<32x256xf32, #tpu.memory_space<vmem>>, vector<32x256xf32>
    tpu.vector_store %arg4[%c0_67, %c0_68], %53 {strides = array<i32>} : memref<32x256xf32, #tpu.memory_space<vmem>>, vector<32x256xf32>,
    return
  }
  func.func @transform_0(%arg0: i32) -> (i32, i32, i32) {
    %c0_i32 = arith.constant 0 : i32
    %c0_i32_0 = arith.constant 0 : i32
    %c0_i32_1 = arith.constant 0 : i32
    return %arg0, %c0_i32, %c0_i32_0 : i32, i32, i32
  }
  func.func @transform_1(%arg0: i32) -> (i32, i32) {
    %c0_i32 = arith.constant 0 : i32
    %c0_i32_0 = arith.constant 0 : i32
    %c0_i32_1 = arith.constant 0 : i32
    return %c0_i32, %c0_i32_0 : i32, i32
  }
  func.func @transform_2(%arg0: i32) -> (i32, i32) {
    %c0_i32 = arith.constant 0 : i32
    %c0_i32_0 = arith.constant 0 : i32
    %c0_i32_1 = arith.constant 0 : i32
    return %c0_i32, %c0_i32_0 : i32, i32
  }
  func.func @transform_3(%arg0: i32) -> (i32, i32) {
    %c0_i32 = arith.constant 0 : i32
    %c0_i32_0 = arith.constant 0 : i32
    return %c0_i32, %arg0 : i32, i32
  }
}

</mosaic_0001>

<bundles_post_ra>
// kernel: tpu_custom_call.1
= control target key start
LH: loop header
LB: loop body
LE: loop exit
PB: predicated region body
PF: predicated region fallthrough
CT: control target
= control target key end

     0   :  { %8 = vsyncpa [#allocation4], 0  ;;  %s1011_s0 = inlined_call_operand.hbm [shape: f32[4,16,128], index: 0, kind: input, shape index: {}]   ;;  %s1012_s1 = inlined_call_operand.vmem [shape: f32[32,80], index: 1, kind: input, shape index: {}]   ;;  %s1013_s2 = inlined_call_operand.vmem [shape: f32[32,1], index: 2, kind: input, shape index: {}]   ;;  %s1014_s3 = inlined_call_operand.hbm [shape: f32[32,512], index: 3, kind: output, shape index: {}]  }
   0x1   :  { %10 = vsyncpa [#allocation4 + $0x1], 0 }
   0x2   :  { %11 = vsyncpa [#allocation5], 0 }
   0x3   :  { %13 = vsyncpa [#allocation5 + $0x1], 0  ;;  %s792_s12 = smov 0   ;;  %s794_s13 = smov 0  }
   0x4   :  { %s796_s14 = smov 0   ;;  %s798_s15 = smov 0  }
   0x5 LB: > { %s813_s16 = sadd.s32 4294967295, %s759_s15   ;;  %s547_s17 = sadd.s32 4294967294, %s759_s15   ;;  %s759_s15 = sphi %s798_s15, %s1024_s15   ;;  %s755_s14 = sphi %s796_s14, %s1023_s14   ;;  %s751_s13 = sphi %s794_s13, %s1022_s13   ;;  %s747_s12 = sphi %s792_s12, %s1021_s12  }
   0x6   : > { %s817_s18 = sadd.s32 1, %s759_s15   ;;  %s26_s19 = sadd.s32 1, %s755_s14 }
   0x7   : > { %s23_s20 = ssub.s32 %s759_s15, %s817_s18  ;;  %p33_p0 = scmp.ne.s32.totalorder %s755_s14, %s751_s13 }
   0x8   : > { %p24_p1 = scmp.eq.s32.totalorder %s23_s20, 0  ;;  %p34_p2 = scmp.eq.s32.totalorder %s759_s15, 0 }
   0x9   : > { %p39_p3 = scmp.ne.s32.totalorder %s751_s13, %s747_s12  ;;  %p40_p4 = scmp.eq.s32.totalorder %s813_s16, 0 }
   0xa   : > { %s829_s21 = scalar_select %p24_p1, %s755_s14, %s26_s19  }
   0xb   : > { %p831_p5 = por %p34_p2, %p33_p0  ;;  %p835_p6 = por %p40_p4, %p39_p3 }
   0xc   : > { %p105_p7 = scmp.eq.s32.totalorder %s813_s16, 1  ;;  %p111_p8 = scmp.eq.s32.totalorder %s547_s17, 1 }
   0xd   : > { %p615_p10 = scmp.lt.s32.totalorder %s759_s15, 2  ;;  %s137_s26 = sand.u32 1, %s755_s14  }
   0xe   : > { %p842_p11 = por %p105_p7, %p33_p0  ;;  %p846_p12 = por %p111_p8, %p39_p3 }
   0xf   : > { %s581_s27 = sshll.u32 %s759_s15, 5  ;;  %s550_s28 = sshll.u32 %s137_s26, 5 }
  0x10   : > { %s147_s4 = scalar_lea.hbm %s1011_s0, %s581_s27  ;;  %s141_s6 = scalar_lea.vmem [#allocation3], %s550_s28 }
  0x11   : > { %s148_s5 = sshll.u32 %s147_s4, 4  ;;  %s150_s7 = sshll.u32 %s141_s6, 4  ;;  %s149_s5 = int_to_ptr.hbm [resolvable:$true] %s148_s5  ;;  %s151_s7 = int_to_ptr.vmem [resolvable:$true] %s150_s7 }
  0x12   : > { %p857_p13 = pnand %p615_p10, %p831_p5  ;;  %p554_p0 = scmp.ge.s32.totalorder %s759_s15, 1 }
  0x13   : > { %p158_p1 = scmp.lt.s32.totalorder %s759_s15, 3  ;;  %s138_s9 = scalar_lea.sflag [#allocation4], %s137_s26 }
  0x14   : > { %s663_s10 = sshra.s32 %s149_s5, 4  ;;  %p667_p3 = pneg %p857_p13  ;;  %s664_s10 = int_to_ptr.hbm [resolvable:$true] %s663_s10 }
  0x15   : > { %s665_s11 = scalar_lea.hbm %s664_s10, 32  ;;  %s670_s20 = scalar_lea.hbm %s1011_s0, 64 }
  0x16   : > { %p666_p2 = scmp.ne.s32.totalorder %s664_s10, %s665_s11  ;;  %p671_p5 = scmp.lt.s32.totalorder %s664_s10, %s1011_s0 }
  0x17   : > { %p672_p8 = scmp.lt.s32.totalorder %s670_s20, %s665_s11 }
  0x18   : > { %p668_p4 = pnand %p667_p3, %p666_p2 }
  0x19   : > { %p673_p10 = por %p672_p8, %p671_p5 }
  0x1a   : > { %p669_p7 = pneg %p668_p4 }
  0x1c   : > { %p674_p9 = pnand %p673_p10, %p669_p7 }
  0x1e   : > { %677 = shalt.err (!%p674_p9)
}
  0x1f   : > { %s761_s26 = smov 128   ;;  %s762_s28 = smov 8  }
  0x20   : > { %610 = dma.hbm_to_vmem [thread:$0]  (!%p857_p13), %s149_s5, 512, %s151_s7, %s138_s9, %s761_s26, %s761_s26, %s762_s28  }
  0x21   : > { %p159_p2 = pnand %p554_p0, %p158_p1 }
  0x22   : > { %s878_s29 = sand.u32 (!%p159_p2), 1, %s751_s13  }
  0x23   : > { %162 = sbr.rel (%p159_p2) target bundleno = 355 (0x163), region = 32  ;;  %s555_s30 = sshll.u32 (!%p159_p2), %s878_s29, 5 }
  0x24   : > { %s165_s4 = scalar_lea.sflag (!%p159_p2), [#allocation4], %s878_s29  ;;  %s168_s6 = scalar_lea.vmem (!%p159_p2), [#allocation3], %s555_s30 }
  0x28   : > { %738 = dma.done.wait (%p835_p6), %s165_s4, 512  }
  0x29   : > { %740 = vsyncadd (%p835_p6), %s165_s4, 4294966784  ;;  %v886_v0 = vld [vmem:[%s168_s6 + $0x8] sm:$0xff]  ;;  %v888_v1 = vld [vmem:[%s168_s6] sm:$0xff]  ;;  %s763_s5 = smov 126   ;;  %s764_s7 = smov 127   ;;  %vm293_vm0 = vcmask 1048560  }
  0x2a   : > { %302 = vrot.lane.b32.xlu0 %v886_v0, %s763_s5  ;;  %300 = vrot.lane.b32.xlu1 %v888_v1, %s763_s5  ;;  %v892_v2 = vld [vmem:[%s168_s6 + $0x18] sm:$0xff]  ;;  %v895_v3 = vld [vmem:[%s168_s6 + $0x10] sm:$0xff]  ;;  %v765_v4 = vmov 0.0   ;;  %s766_s23 = smov 1   ;;  %s767_s8 = smov 2   ;;  %vm263_vm1 = vcmask 1048568  }
  0x2b   : > { %272 = vrot.lane.b32.xlu2 %v886_v0, %s764_s7  ;;  %295 = vst.msk [vmem:[#allocation2 + $0x90] sm:$0xff] %vm293_vm0, %v765_v4  ;;  %vm276_vm2 = vcmask 1039360   ;;  %vm225_vm3 = vcmask 7168   ;;  %vm238_vm4 = vcmask 1047560   ;;  %vm306_vm5 = vcmask 1031168   ;;  %v347_v28 = vld [vmem:[%s1013_s2] sm:$0xff] }
  0x2c   : > { %294 = vst.msk [vmem:[#allocation2 + $0x80] sm:$0xff] %vm293_vm0, %v765_v4  ;;  %vm194_vm6 = vcmask 15360   ;;  %vm207_vm7 = vcmask 1047568   ;;  %v768_v22 = vmov 0   ;;  %v349_v29 = vld [vmem:[%s1013_s2 + $0x10] sm:$0xff]  ;;  %v348_v35 = vld [vmem:[%s1013_s2 + $0x8] sm:$0xff] }
  0x2d   : > { %309 = vst.msk [vmem:[#allocation2 + $0x88] sm:$0xff] %vm293_vm0, %v765_v4  ;;  %660 = vset.pattern.permute.xlu1 %v768_v22  ;;  %662 = vset.pattern.permute.xlu0 %v768_v22  ;;  %v350_v36 = vld [vmem:[%s1013_s2 + $0x18] sm:$0xff]  ;;  %v325_v40 = vld [vmem:[%s1012_s1 + $0x10] sm:$0xff]  ;;  %vm371_vm8 = vcmask 654336   ;;  %v323_v42 = vld [vmem:[%s1012_s1] sm:$0xff]  ;;  %s582_s10 = sshll.u32 %s813_s16, 4 }
  0x2e   : > { %310 = vst.msk [vmem:[#allocation2 + $0x98] sm:$0xff] %vm293_vm0, %v765_v4  ;;  %661 = vset.pattern.permute.xlu2 %v768_v22  ;;  %v326_v44 = vld [vmem:[%s1012_s1 + $0x18] sm:$0xff]  ;;  %v324_v45 = vld [vmem:[%s1012_s1 + $0x8] sm:$0xff]  ;;  %s470_s19 = scalar_lea.hbm %s1014_s3, %s582_s10  ;;  %s459_s16 = scalar_lea.sflag [#allocation5], %s878_s29 }
  0x2f   : > { %265 = vst.msk [vmem:[#allocation2 + $0x70] sm:$0xff] %vm263_vm1, %v765_v4  ;;  %s473_s22 = sshll.u32 %s470_s19, 4  ;;  %s713_s4 = scalar_lea.hbm %s1014_s3, 128  ;;  %s474_s22 = int_to_ptr.hbm [resolvable:$true] %s473_s22 }
  0x30   : > { %264 = vst.msk [vmem:[#allocation2 + $0x60] sm:$0xff] %vm263_vm1, %v765_v4  ;;  %s707_s27 = sshra.s32 %s474_s22, 4  ;;  %s708_s27 = int_to_ptr.hbm [resolvable:$true] %s707_s27 }
  0x31   : > { %279 = vst.msk [vmem:[#allocation2 + $0x68] sm:$0xff] %vm263_vm1, %v765_v4  ;;  %s709_s26 = scalar_lea.hbm %s708_s27, 64  ;;  %p714_p0 = scmp.lt.s32.totalorder %s708_s27, %s1014_s3 }
  0x32   : > { %317 = vrot.lane.b32.xlu0 %v892_v2, %s763_s5  ;;  %315 = vrot.lane.b32.xlu1 %v895_v3, %s763_s5  ;;  %280 = vst.msk [vmem:[#allocation2 + $0x78] sm:$0xff] %vm263_vm1, %v765_v4  ;;  %p710_p6 = scmp.ne.s32.totalorder %s708_s27, %s709_s26  ;;  %p715_p1 = scmp.lt.s32.totalorder %s713_s4, %s709_s26 }
  0x33   : > { %287 = vrot.lane.b32.xlu2 %v892_v2, %s764_s7  ;;  %227 = vst.msk [vmem:[#allocation2 + $0x30] sm:$0xff] %vm225_vm3, %v765_v4 }
  0x34   : > { %226 = vst.msk [vmem:[#allocation2 + $0x20] sm:$0xff] %vm225_vm3, %v765_v4  ;;  %p711_p9 = pnand %p710_p6, %p842_p11  ;;  %p716_p3 = por %p715_p1, %p714_p0 }
  0x35   : > { %241 = vst.msk [vmem:[#allocation2 + $0x28] sm:$0xff] %vm225_vm3, %v765_v4 }
  0x36   : > { %242 = vst.msk [vmem:[#allocation2 + $0x38] sm:$0xff] %vm225_vm3, %v765_v4  ;;  %p712_p13 = pneg %p711_p9 }
  0x37   : > { %196 = vst.msk [vmem:[#allocation2 + $0x10] sm:$0xff] %vm194_vm6, %v765_v4 }
  0x38   : > { %195 = vst.msk [vmem:[#allocation2] sm:$0xff] %vm194_vm6, %v765_v4  ;;  %p717_p4 = pnand %p716_p3, %p712_p13 }
  0x39   : > { %210 = vst.msk [vmem:[#allocation2 + $0x8] sm:$0xff] %vm194_vm6, %v765_v4 }
  0x3a   : > { %270 = vrot.lane.b32.xlu0 %v888_v1, %s764_s7  ;;  %285 = vrot.lane.b32.xlu1 %v895_v3, %s764_s7  ;;  %211 = vst.msk [vmem:[#allocation2 + $0x18] sm:$0xff] %vm194_vm6, %v765_v4 }
  0x3b   : > { %234 = vrot.lane.b32.xlu2 %v886_v0, %s766_s23 }
  0x42   : > { %249 = vrot.lane.b32.xlu0 %v892_v2, %s766_s23  ;;  %232 = vrot.lane.b32.xlu1 %v888_v1, %s766_s23 }
  0x43   : > { %247 = vrot.lane.b32.xlu2 %v895_v3, %s766_s23 }
  0x4a   : > { %203 = vrot.lane.b32.xlu0 %v886_v0, %s767_s8  ;;  %219 = vrot.lane.b32.xlu1 %v892_v2, %s767_s8 }
  0x4b   : > { %201 = vrot.lane.b32.xlu2 %v888_v1, %s767_s8 }
  0x52   : > { %217 = vrot.lane.b32.xlu0 %v895_v3, %s767_s8  ;;  %353 = vperm.xlu1 %660, %v347_v28   ;;  %s556_s8 = sshll.u32 %s878_s29, 6 }
  0x53   : > { %358 = vperm.xlu2 %661, %v348_v35   ;;  %s967_s9 = scalar_lea.vmem [#allocation6], %s556_s8 }
  0x54   : > { %s471_s20 = sshll.u32 %s967_s9, 4  ;;  %s472_s20 = int_to_ptr.vmem [resolvable:$true] %s471_s20 }
  0x5a   : > { %363 = vperm.xlu0 %662, %v349_v29   ;;  %368 = vperm.xlu1 %660, %v350_v36  }
  0x85   : > { %v273_v5 = vpop.permute.xlu2 %272 }
  0x86   : > { %278 = vst.msk [vmem:[#allocation2 + $0x70] sm:$0xff] %vm276_vm2, %v273_v5 }
  0x8d   : > { %v288_v6 = vpop.permute.xlu2 %287  ;;  %v341_v16 = vld [vmem:[#allocation2 + $0x70] sm:$0xff] }
  0x8e   : > { %292 = vst.msk [vmem:[#allocation2 + $0x78] sm:$0xff] %vm276_vm2, %v288_v6 }
  0x95   : > { %v235_v7 = vpop.permute.xlu2 %234  ;;  %v342_v21 = vld [vmem:[#allocation2 + $0x78] sm:$0xff] }
  0x96   : > { %240 = vst.msk [vmem:[#allocation2 + $0x30] sm:$0xff] %vm238_vm4, %v235_v7 }
  0x9c   : > { %v303_v8 = vpop.permute.xlu0 %302  ;;  %v301_v9 = vpop.permute.xlu1 %300 }
  0x9d   : > { %308 = vst.msk [vmem:[#allocation2 + $0x90] sm:$0xff] %vm306_vm5, %v303_v8  ;;  %v248_v10 = vpop.permute.xlu2 %247  ;;  %v333_v27 = vld [vmem:[#allocation2 + $0x30] sm:$0xff] }
  0x9e   : > { %307 = vst.msk [vmem:[#allocation2 + $0x80] sm:$0xff] %vm306_vm5, %v301_v9 }
  0x9f   : > { %253 = vst.msk [vmem:[#allocation2 + $0x28] sm:$0xff] %vm238_vm4, %v248_v10 }
  0xa4   : > { %v318_v11 = vpop.permute.xlu0 %317  ;;  %v345_v12 = vld [vmem:[#allocation2 + $0x90] sm:$0xff]  ;;  %v316_v13 = vpop.permute.xlu1 %315 }
  0xa5   : > { %322 = vst.msk [vmem:[#allocation2 + $0x98] sm:$0xff] %vm306_vm5, %v318_v11  ;;  %390 = vmatpush.msra.mxu0 %v345_v12  ;;  %583 = vmatpush.msra.mxu2 %v345_v12  ;;  %v343_v14 = vld [vmem:[#allocation2 + $0x80] sm:$0xff]  ;;  %v202_v15 = vpop.permute.xlu2 %201 }
  0xa6   : > { %321 = vst.msk [vmem:[#allocation2 + $0x88] sm:$0xff] %vm306_vm5, %v316_v13  ;;  %v332_v33 = vld [vmem:[#allocation2 + $0x28] sm:$0xff] }
  0xa7   : > { %391 = vmatpush.msra.mxu0 %v343_v14  ;;  %584 = vmatpush.msra.mxu2 %v343_v14  ;;  %208 = vst.msk [vmem:[#allocation2] sm:$0xff] %vm207_vm7, %v202_v15 }
  0xa9   : > { %392 = vmatpush.msra.mxu0 %v341_v16  ;;  %585 = vmatpush.msra.mxu2 %v341_v16 }
  0xac   : > { %v271_v17 = vpop.permute.xlu0 %270  ;;  %v346_v18 = vld [vmem:[#allocation2 + $0x98] sm:$0xff]  ;;  %v286_v19 = vpop.permute.xlu1 %285 }
  0xad   : > { %277 = vst.msk [vmem:[#allocation2 + $0x60] sm:$0xff] %vm276_vm2, %v271_v17  ;;  %419 = vmatpush.msra.mxu1 %v346_v18  ;;  %593 = vmatpush.msra.mxu3 %v346_v18  ;;  %v344_v20 = vld [vmem:[#allocation2 + $0x88] sm:$0xff]  ;;  %v359_v51 = vpop.permute.xlu2 %358 }
  0xae   : > { %291 = vst.msk [vmem:[#allocation2 + $0x68] sm:$0xff] %vm276_vm2, %v286_v19  ;;  %v327_v39 = vld [vmem:[#allocation2] sm:$0xff] }
  0xaf   : > { %420 = vmatpush.msra.mxu1 %v344_v20  ;;  %594 = vmatpush.msra.mxu3 %v344_v20 }
  0xb1   : > { %421 = vmatpush.msra.mxu1 %v342_v21  ;;  %595 = vmatpush.msra.mxu3 %v342_v21 }
  0xb4   : > { %v250_v23 = vpop.permute.xlu0 %249  ;;  %v339_v24 = vld [vmem:[#allocation2 + $0x60] sm:$0xff]  ;;  %v233_v25 = vpop.permute.xlu1 %232 }
  0xb5   : > { %254 = vst.msk [vmem:[#allocation2 + $0x38] sm:$0xff] %vm238_vm4, %v250_v23  ;;  %393 = vmatpush.msra.mxu0 %v339_v24  ;;  %586 = vmatpush.msra.mxu2 %v339_v24  ;;  %v340_v26 = vld [vmem:[#allocation2 + $0x68] sm:$0xff] }
  0xb6   : > { %422 = vmatpush.msra.mxu1 %v340_v26  ;;  %596 = vmatpush.msra.mxu3 %v340_v26  ;;  %239 = vst.msk [vmem:[#allocation2 + $0x20] sm:$0xff] %vm238_vm4, %v233_v25 }
  0xb7   : > { %394 = vmatpush.msra.mxu0 %v886_v0  ;;  %587 = vmatpush.msra.mxu2 %v886_v0 }
  0xb8   : > { %423 = vmatpush.msra.mxu1 %v892_v2  ;;  %597 = vmatpush.msra.mxu3 %v892_v2 }
  0xb9   : > { %395 = vmatpush.msra.mxu0 %v888_v1  ;;  %588 = vmatpush.msra.mxu2 %v888_v1 }
  0xba   : > { %424 = vmatpush.msra.mxu1 %v895_v3  ;;  %598 = vmatpush.msra.mxu3 %v895_v3 }
  0xbb   : > { %396 = vmatpush.msra.mxu0 %v333_v27  ;;  %589 = vmatpush.msra.mxu2 %v333_v27 }
  0xbc   : > { %v204_v30 = vpop.permute.xlu0 %203  ;;  %v334_v31 = vld [vmem:[#allocation2 + $0x38] sm:$0xff]  ;;  %v220_v32 = vpop.permute.xlu1 %219 }
  0xbd   : > { %209 = vst.msk [vmem:[#allocation2 + $0x10] sm:$0xff] %vm207_vm7, %v204_v30  ;;  %425 = vmatpush.msra.mxu1 %v334_v31  ;;  %599 = vmatpush.msra.mxu3 %v334_v31  ;;  %v331_v34 = vld [vmem:[#allocation2 + $0x20] sm:$0xff] }
  0xbe   : > { %224 = vst.msk [vmem:[#allocation2 + $0x18] sm:$0xff] %vm207_vm7, %v220_v32  ;;  %397 = vmatpush.msra.mxu0 %v331_v34  ;;  %590 = vmatpush.msra.mxu2 %v331_v34 }
  0xbf   : > { %426 = vmatpush.msra.mxu1 %v332_v33  ;;  %600 = vmatpush.msra.mxu3 %v332_v33 }
  0xc4   : > { %v218_v37 = vpop.permute.xlu0 %217  ;;  %v329_v38 = vld [vmem:[#allocation2 + $0x10] sm:$0xff]  ;;  %v354_v46 = vpop.permute.xlu1 %353 }
  0xc5   : > { %223 = vst.msk [vmem:[#allocation2 + $0x8] sm:$0xff] %vm207_vm7, %v218_v37  ;;  %398 = vmatpush.msra.mxu0 %v329_v38  ;;  %591 = vmatpush.msra.mxu2 %v329_v38  ;;  %v330_v41 = vld [vmem:[#allocation2 + $0x18] sm:$0xff] }
  0xc6   : > { %427 = vmatpush.msra.mxu1 %v330_v41  ;;  %601 = vmatpush.msra.mxu3 %v330_v41 }
  0xc7   : > { %592 = vmatpush.msra.mxu2 %v327_v39  ;;  %399 = vmatpush.msra.mxu0 %v327_v39 }
  0xc8   : > { %569 = vmatmul.msk.f32.vlgmr.msra.gmra.mxu2 %vm371_vm8, %v325_v40  ;;  %567 = vmatmul.msk.f32.vlgmr.msra.gmra.mxu0 %vm371_vm8, %v323_v42 }
  0xcc   : > { %v328_v43 = vld [vmem:[#allocation2 + $0x8] sm:$0xff]  ;;  %v364_v50 = vpop.permute.xlu0 %363  ;;  %v369_v62 = vpop.permute.xlu1 %368 }
  0xcd   : > { %428 = vmatpush.msra.mxu1 %v328_v43  ;;  %602 = vmatpush.msra.mxu3 %v328_v43 }
  0xce   : > { %573 = vmatmul.msk.f32.vlgmr.msra.gmra.mxu3 %vm371_vm8, %v325_v40  ;;  %571 = vmatmul.msk.f32.vlgmr.msra.gmra.mxu1 %vm371_vm8, %v323_v42 }
  0xd0   : > { %570 = vmatmul.msk.f32.gmra.mxu2 %vm371_vm8, %v326_v44  ;;  %568 = vmatmul.msk.f32.gmra.mxu0 %vm371_vm8, %v324_v45 }
  0xd6   : > { %574 = vmatmul.msk.f32.gmra.mxu3 %vm371_vm8, %v326_v44  ;;  %572 = vmatmul.msk.f32.gmra.mxu1 %vm371_vm8, %v324_v45 }
 0x145   : > { %v401_v47 = vpop.f32.mrf.mxu0 }
 0x146   : > { %v402_v48 = vadd.f32 %v401_v47, %v354_v46 }
 0x148   : > { %v442_v49 = vmax.f32 %v402_v48, 0.0 }
 0x14a   : > { %450 = vst [vmem:[%s967_s9] sm:$0xff] %v442_v49 }
 0x14b   : > { %v407_v52 = vpop.f32.mrf.mxu2  ;;  %v430_v53 = vpop.f32.mrf.mxu1 }
 0x14c   : > { %v431_v54 = vadd.f32 %v430_v53, %v354_v46  ;;  %v408_v55 = vadd.f32 %v407_v52, %v364_v50 }
 0x14d   : > { %v404_v56 = vpop.f32.mrf.mxu0 }
 0x14e   : > { %v443_v57 = vmax.f32 %v431_v54, 0.0  ;;  %v446_v58 = vmax.f32 %v408_v55, 0.0  ;;  %v405_v59 = vadd.f32 %v404_v56, %v359_v51 }
 0x150   : > { %451 = vst [vmem:[%s967_s9 + $0x8] sm:$0xff] %v443_v57  ;;  %v444_v60 = vmax.f32 %v405_v59, 0.0 }
 0x151   : > { %v436_v61 = vpop.f32.mrf.mxu3  ;;  %454 = vst [vmem:[%s967_s9 + $0x20] sm:$0xff] %v446_v58 }
 0x152   : > { %v437_v63 = vadd.f32 %v436_v61, %v364_v50  ;;  %452 = vst [vmem:[%s967_s9 + $0x10] sm:$0xff] %v444_v60 }
 0x153   : > { %v410_v0 = vpop.f32.mrf.mxu2  ;;  %v433_v1 = vpop.f32.mrf.mxu1 }
 0x154   : > { %v447_v2 = vmax.f32 %v437_v63, 0.0  ;;  %v411_v3 = vadd.f32 %v410_v0, %v369_v62  ;;  %v434_v4 = vadd.f32 %v433_v1, %v359_v51 }
 0x156   : > { %455 = vst [vmem:[%s967_s9 + $0x28] sm:$0xff] %v447_v2  ;;  %v448_v5 = vmax.f32 %v411_v3, 0.0  ;;  %v445_v6 = vmax.f32 %v434_v4, 0.0 }
 0x158   : > { %456 = vst [vmem:[%s967_s9 + $0x30] sm:$0xff] %v448_v5 }
 0x159   : > { %v439_v7 = vpop.f32.mrf.mxu3  ;;  %453 = vst [vmem:[%s967_s9 + $0x18] sm:$0xff] %v445_v6 }
 0x15a   : > { %v440_v8 = vadd.f32 %v439_v7, %v369_v62 }
 0x15c   : > { %v449_v9 = vmax.f32 %v440_v8, 0.0 }
 0x15e   : > { %457 = vst [vmem:[%s967_s9 + $0x38] sm:$0xff] %v449_v9 }
 0x15f   : > { %720 = shalt.err (!%p717_p4)
}
 0x160   : > { %s769_s29 = smov 256   ;;  %s770_s7 = smov 512  }
 0x161   : > { %s771_s23 = smov 16  }
 0x162   : > { %605 = dma.vmem_to_hbm [thread:$0]  (%p842_p11), %s472_s20, 1024, %s474_s22, %s459_s16, %s769_s29, %s770_s7, %s771_s23  }
 0x163 PF: > { %s488_s8 = sand.u32 1, %s747_s12   ;;  %p1020_p7 = scmp.ge.s32.totalorder %s759_s15, 2 }
 0x164   : > { %s489_s9 = scalar_lea.sflag [#allocation5], %s488_s8 }
 0x165   : > { %p612_p5 = pnand %p1020_p7, %p846_p12 }
 0x167   : > { %p613_p8 = pneg %p612_p5 }
 0x169   : > { %742 = dma.done.wait (%p613_p8), %s489_s9, 1024  }
 0x16a   : > { %744 = vsyncadd (%p613_p8), %s489_s9, 4294966272  ;;  %p16_p10 = scmp.ge.s32.totalorder %s817_s18, 4   ;;  %s1021_s12 = smov %s751_s13 }
 0x16b   : > { %s1022_s13 = smov %s755_s14  ;;  %s1023_s14 = smov %s829_s21 }
 0x16c   : > { %s1024_s15 = smov %s817_s18  ;;  %18 = sbr.rel (!%p16_p10) target bundleno = 5 (0x5), region = 78 }
 0x171   :  { %495 = vsyncpa [#allocation4], 1 }
 0x172   :  { %497 = vsyncpa [#allocation4 + $0x1], 1 }
 0x173   :  { %498 = vsyncpa [#allocation5], 1 }
 0x174   :  { %500 = vsyncpa [#allocation5 + $0x1], 1 }

</bundles_post_ra>
